<compile_context>
chip_gen: v7x
topology: tpu7x:2x2x1
jax: 0.10.0
libtpu: 0.0.40
codegen_flags: <defaults>
</compile_context>

<pallas_src>
import functools

import jax
import jax.numpy as jnp
from jax.experimental import pallas as pl
from jax.experimental.pallas import tpu as pltpu


_FALLBACK_VMEM_BYTES = 64 << 20        # conservative (v7x per-TC VMEM)
_MIN_GRID_STEPS = 4                    # >=4 even steps: megacore + pipelining


def _vmem_capacity_bytes():
    try:
        cap = int(pltpu.get_tpu_info().vmem_capacity_bytes)
        if cap > 0:
            return cap
    except Exception:
        pass
    return _FALLBACK_VMEM_BYTES


def _target_out_block_bytes(cap):
    # v7x (64 MiB per-TC VMEM): ~8 MiB output blocks; v5e/v6e (128 MiB): ~12 MiB.
    return (8 << 20) if cap <= (64 << 20) else (12 << 20)


def _round_up(n, m):
    return ((n + m - 1) // m) * m


def _sublane(dtype):
    # Rows packed per sublane group: 8 for f32, 16 for bf16/f16, 32 for int8/fp8.
    it = jnp.dtype(dtype).itemsize
    return max(8, 8 * max(1, 4 // it))


def _choose_block_channels(nc, in_bytes_per_c, out_bytes_per_c, cap, sublane):
    """#channels per grid step.

    `in_bytes_per_c` / `out_bytes_per_c` are *layout-padded* per-channel byte
    counts.  The block is chosen so that:
      (a) the double-buffered in+out working set fits in half of VMEM,
      (b) the output block is ~the chip's target size (amortizes the
          ~0.35us per-step overhead),
      (c) the grid keeps >= _MIN_GRID_STEPS (even) steps when nc allows it,
      (d) bc is a multiple of `sublane` when bc is the block's second-minor
          dim (H-only path), re-checked against the VMEM bound.
    """
    target = _target_out_block_bytes(cap)
    live_per_c = 2 * (in_bytes_per_c + out_bytes_per_c)   # double-buffered in+out
    bc = max(1, min(target // max(1, out_bytes_per_c),
                    (cap // 2) // max(1, live_per_c)))
    bc = min(bc, nc)
    # (c) prefer >= _MIN_GRID_STEPS even steps so the "parallel" axis splits
    # across both v7x TensorCores and keeps >=2 steps per core for pipelining.
    if nc >= _MIN_GRID_STEPS * sublane:
        steps = max(_MIN_GRID_STEPS, pl.cdiv(nc, bc))
        steps += steps % 2
        bc = min(bc, pl.cdiv(nc, steps))
    # (d) dtype-aware sublane rounding (only matters when bc is second-minor).
    if sublane > 1 and bc != nc:
        bc = (bc // sublane) * sublane
        if bc == 0:
            # VMEM bound is below one sublane group; a sub-sublane block would
            # violate the (sublane, 128) block constraint, so take one group
            # (vmem_limit below is sized from the actual bc).
            bc = min(nc, sublane)
    return int(max(1, min(bc, nc)))


def _compiler_params(bc, in_bytes_per_c, out_bytes_per_c, cap):
    live = 2 * bc * (in_bytes_per_c + out_bytes_per_c)     # layout-padded bytes
    vmem_limit = int(min(max(32 << 20, 2 * live), (cap * 3) // 4))
    return pltpu.CompilerParams(
        # single collapsed grid axis is fully parallel -> shards across the
        # two TensorCores on v7x; harmless on single-TC v5e/v6e.
        dimension_semantics=("parallel",),
        vmem_limit_bytes=vmem_limit,
    )


def _cost_estimate(nc, in_elems_per_c, out_elems_per_c, itemsize):
    # Pure HBM streaming: no flops, just bytes.
    return pl.CostEstimate(
        flops=0,
        transcendentals=0,
        bytes_accessed=int(nc * (in_elems_per_c + out_elems_per_c) * itemsize),
    )


def _pad_hw_kernel(x_ref, o_ref, *, ht, hb, wl, wr):
    """General path: pad H and/or W; single aligned full-block store."""
    bc, h, w = x_ref.shape
    dt = o_ref.dtype
    v = x_ref[...]
    if wl > 0 or wr > 0:
        parts = []
        if wl > 0:
            parts.append(jnp.zeros((bc, h, wl), dt))
        parts.append(v)
        if wr > 0:
            parts.append(jnp.zeros((bc, h, wr), dt))
        v = jnp.concatenate(parts, axis=2)
    if ht > 0 or hb > 0:
        w_out = w + wl + wr
        parts = []
        if ht > 0:
            parts.append(jnp.zeros((bc, ht, w_out), dt))
        parts.append(v)
        if hb > 0:
            parts.append(jnp.zeros((bc, hb, w_out), dt))
        v = jnp.concatenate(parts, axis=1)
    o_ref[...] = v


def _pad_rows_kernel(x_ref, o_ref, *, n_head, n_tail):
    """H-only path: (H, W) flattened to H*W -> lane-dense single store."""
    bc = x_ref.shape[0]
    dt = o_ref.dtype
    parts = []
    if n_head > 0:
        parts.append(jnp.zeros((bc, n_head), dt))
    parts.append(x_ref[...])
    if n_tail > 0:
        parts.append(jnp.zeros((bc, n_tail), dt))
    o_ref[...] = jnp.concatenate(parts, axis=1) if len(parts) > 1 else parts[0]


def pad_forward(x, pad):
    """Constant zero-padding of the last 1 or 2 dims (== F.pad(x, pad))."""
    pad = tuple(int(p) for p in pad)
    if len(pad) == 2:
        pad = (pad[0], pad[1], 0, 0)
    assert len(pad) == 4, "only padding of the last 1 or 2 dims is implemented"
    # TODO(synk): negative pads (cropping), 6/8-length pads (padding C/N dims)
    # and non-zero constant values are not handled.
    wl, wr, ht, hb = pad
    assert min(pad) >= 0
    assert x.ndim >= 2

    lead = x.shape[:-2]
    h, w = int(x.shape[-2]), int(x.shape[-1])
    nc = 1
    for d in lead:
        nc *= int(d)
    h_out, w_out = h + ht + hb, w + wl + wr
    out_shape_full = (*lead, h_out, w_out)

    itemsize = jnp.dtype(x.dtype).itemsize
    sub = _sublane(x.dtype)
    cap = _vmem_capacity_bytes()

    if wl == 0 and wr == 0:
        # H-only padding: flatten (H, W) -> H*W so output rows are lane-dense.
        # Layout-padded per-channel footprint (bc itself is the sublane dim,
        # handled by rounding bc to a multiple of `sub`).
        in_b = _round_up(h * w, 128) * itemsize
        out_b = _round_up(h_out * w, 128) * itemsize
        bc = _choose_block_channels(nc, in_b, out_b, cap, sublane=sub)
        x2 = x.reshape(nc, h * w)
        kernel = functools.partial(_pad_rows_kernel, n_head=ht * w, n_tail=hb * w)
        out = pl.pallas_call(
            kernel,
            out_shape=jax.ShapeDtypeStruct((nc, h_out * w), x.dtype),
            grid=(pl.cdiv(nc, bc),),
            in_specs=[pl.BlockSpec((bc, h * w), lambda i: (i, 0))],
            out_specs=pl.BlockSpec((bc, h_out * w), lambda i: (i, 0)),
            compiler_params=_compiler_params(bc, in_b, out_b, cap),
            cost_estimate=_cost_estimate(nc, h * w, h_out * w, itemsize),
        )(x2)
        return out.reshape(out_shape_full)

    # General case: pad W (and possibly H).
    # Layout-padded per-channel footprint: (sublane, 128)-tiled (H, W) planes.
    in_b = _round_up(h, sub) * _round_up(w, 128) * itemsize
    out_b = _round_up(h_out, sub) * _round_up(w_out, 128) * itemsize
    bc = _choose_block_channels(nc, in_b, out_b, cap, sublane=1)
    # TODO(synk): for very large single-channel padded planes (one block
    # exceeding the VMEM budget) an extra H-tiling grid axis would be needed;
    # and a lane-dense flattened out_spec would help when w_out << 128.
    x2 = x.reshape(nc, h, w)
    kernel = functools.partial(_pad_hw_kernel, ht=ht, hb=hb, wl=wl, wr=wr)
    out = pl.pallas_call(
        kernel,
        out_shape=jax.ShapeDtypeStruct((nc, h_out, w_out), x.dtype),
        grid=(pl.cdiv(nc, bc),),
        in_specs=[pl.BlockSpec((bc, h, w), lambda i: (i, 0, 0))],
        out_specs=pl.BlockSpec((bc, h_out, w_out), lambda i: (i, 0, 0)),
        compiler_params=_compiler_params(bc, in_b, out_b, cap),
        cost_estimate=_cost_estimate(nc, h * w, h_out * w_out, itemsize),
    )(x2)
    return out.reshape(out_shape_full)


if __name__ == "__main__":
    key = jax.random.PRNGKey(0)
    x = jax.random.normal(key, (2, 4, 16, 16), dtype=jnp.float32)

    # Case 1: pad both W and H (general path).
    pad = (1, 2, 3, 4)   # (left, right, top, bottom), torch convention
    out = jax.block_until_ready(pad_forward(x, pad))
    ref = jnp.pad(x, ((0, 0), (0, 0), (pad[2], pad[3]), (pad[0], pad[1])))
    assert out.shape == (2, 4, 16 + 3 + 4, 16 + 1 + 2), out.shape
    assert out.dtype == x.dtype
    assert jnp.array_equal(out, ref), "mismatch vs reference pad (H+W)"

    # Case 2: H-only padding (lane-dense flattened path).
    pad2 = (0, 0, 2, 1)
    out2 = jax.block_until_ready(pad_forward(x, pad2))
    ref2 = jnp.pad(x, ((0, 0), (0, 0), (2, 1), (0, 0)))
    assert jnp.array_equal(out2, ref2), "mismatch vs reference pad (H only)"

    # Case 3: last-dim-only padding given as a 2-element pad tuple.
    pad3 = (3, 1)
    out3 = jax.block_until_ready(pad_forward(x, pad3))
    ref3 = jnp.pad(x, ((0, 0), (0, 0), (0, 0), (3, 1)))
    assert jnp.array_equal(out3, ref3), "mismatch vs reference pad (W only)"

    # Case 4: bf16 H-only padding (exercises dtype-aware sublane rounding).
    xb = x.astype(jnp.bfloat16)
    out4 = jax.block_until_ready(pad_forward(xb, (0, 0, 1, 2)))
    ref4 = jnp.pad(xb, ((0, 0), (0, 0), (1, 2), (0, 0)))
    assert out4.dtype == jnp.bfloat16
    assert jnp.array_equal(out4, ref4), "mismatch vs reference pad (bf16)"

    print("KERNEL_OK")
</pallas_src>

<mosaic_0001>
module attributes {stable_mosaic.version = 11 : i64} {
  func.func @_pad_hw_kernel(%arg0: i32, %arg1: memref<2x16x16xf32, #tpu.memory_space<vmem>>, %arg2: memref<2x23x19xf32, #tpu.memory_space<vmem>>) attributes {dimension_semantics = [#tpu.dimension_semantics<parallel>], iteration_bounds = array<i64: 4>, scalar_prefetch = 0 : i64, scratch_operands = 0 : i64, tpu.core_type = #tpu.core_type<tc>, window_params = [{transform_indices = @transform_0, window_bounds = array<i64: 2, 16, 16>}, {transform_indices = @transform_1, window_bounds = array<i64: 2, 23, 19>}]} {
    %c0 = arith.constant 0 : index
    %c0_0 = arith.constant 0 : index
    %c0_1 = arith.constant 0 : index
    %0 = vector.load %arg1[%c0, %c0_0, %c0_1] : memref<2x16x16xf32, #tpu.memory_space<vmem>>, vector<2x16x16xf32>
    %cst = arith.constant 0.000000e+00 : f32
    %1 = vector.broadcast %cst : f32 to vector<2x16x1xf32>
    %cst_2 = arith.constant 0.000000e+00 : f32
    %2 = vector.broadcast %cst_2 : f32 to vector<2x16x2xf32>
    %3 = tpu.concatenate %1, %0, %2 in 2 : vector<2x16x1xf32>, vector<2x16x16xf32>, vector<2x16x2xf32> -> vector<2x16x19xf32>
    %cst_3 = arith.constant 0.000000e+00 : f32
    %4 = vector.broadcast %cst_3 : f32 to vector<2x3x19xf32>
    %cst_4 = arith.constant 0.000000e+00 : f32
    %5 = vector.broadcast %cst_4 : f32 to vector<2x4x19xf32>
    %6 = tpu.concatenate %4, %3, %5 in 1 : vector<2x3x19xf32>, vector<2x16x19xf32>, vector<2x4x19xf32> -> vector<2x23x19xf32>
    %c0_5 = arith.constant 0 : index
    %c0_6 = arith.constant 0 : index
    %c0_7 = arith.constant 0 : index
    %7 = vector.load %arg2[%c0_5, %c0_6, %c0_7] : memref<2x23x19xf32, #tpu.memory_space<vmem>>, vector<2x23x19xf32>
    tpu.vector_store %arg2[%c0_5, %c0_6, %c0_7], %6 {strides = array<i32>} : memref<2x23x19xf32, #tpu.memory_space<vmem>>, vector<2x23x19xf32>,
    return
  }
  func.func @transform_0(%arg0: i32) -> (i32, i32, i32) {
    %c0_i32 = arith.constant 0 : i32
    %c0_i32_0 = arith.constant 0 : i32
    %c0_i32_1 = arith.constant 0 : i32
    return %arg0, %c0_i32, %c0_i32_0 : i32, i32, i32
  }
  func.func @transform_1(%arg0: i32) -> (i32, i32, i32) {
    %c0_i32 = arith.constant 0 : i32
    %c0_i32_0 = arith.constant 0 : i32
    %c0_i32_1 = arith.constant 0 : i32
    return %arg0, %c0_i32, %c0_i32_0 : i32, i32, i32
  }
}

</mosaic_0001>

<bundles_post_ra>
// kernel: tpu_custom_call.1
= control target key start
LH: loop header
LB: loop body
LE: loop exit
PB: predicated region body
PF: predicated region fallthrough
CT: control target
= control target key end

     0   :  { %6 = vsyncpa [#allocation3], 0  ;;  %s534_s0 = inlined_call_operand.hbm [shape: f32[8,16,16], index: 0, kind: input, shape index: {}]   ;;  %s535_s1 = inlined_call_operand.vmem [shape: f32[8,23,19], index: 1, kind: output, shape index: {}]  }
   0x1   :  { %8 = vsyncpa [#allocation3 + $0x1], 0  ;;  %s409_s6 = smov 0   ;;  %s411_s7 = smov 0  }
   0x2   :  { %s413_s8 = smov 0   ;;  %s415_s9 = smov 0  }
   0x3 LB: > { %s270_s10 = sadd.s32 4294967295, %s393_s9   ;;  %s429_s11 = sadd.s32 1, %s393_s9   ;;  %s393_s9 = sphi %s415_s9, %s542_s9   ;;  %s389_s8 = sphi %s413_s8, %s541_s8   ;;  %s385_s7 = sphi %s411_s7, %s540_s7   ;;  %s381_s6 = sphi %s409_s6, %s539_s6  }
   0x4   : > { %s18_s12 = ssub.s32 %s393_s9, %s429_s11  ;;  %s21_s13 = sadd.s32 1, %s389_s8 }
   0x5   : > { %p19_p0 = scmp.eq.s32.totalorder %s18_s12, 0  ;;  %p28_p1 = scmp.ne.s32.totalorder %s389_s8, %s385_s7 }
   0x6   : > { %p29_p2 = scmp.eq.s32.totalorder %s393_s9, 0  ;;  %p34_p3 = scmp.ne.s32.totalorder %s385_s7, %s381_s6 }
   0x7   : > { %s439_s14 = scalar_select %p19_p0, %s389_s8, %s21_s13  }
   0x8   : > { %p30_p4 = por %p29_p2, %p28_p1  ;;  %p35_p5 = scmp.eq.s32.totalorder %s270_s10, 0 }
   0x9   : > { %p293_p6 = scmp.lt.s32.totalorder %s393_s9, 4  ;;  %s84_s16 = sand.u32 1, %s389_s8  }
   0xa   : > { %p444_p7 = por %p35_p5, %p34_p3  ;;  %s274_s17 = sshll.u32 %s84_s16, 5 }
   0xb   : > { %s285_s18 = sshll.u32 %s393_s9, 9  ;;  %s88_s22 = scalar_lea.vmem [#allocation2], %s274_s17 }
   0xc   : > { %s453_s21 = scalar_lea.hbm %s534_s0, %s285_s18  ;;  %s96_s23 = sshll.u32 %s88_s22, 4  ;;  %s455_s23 = int_to_ptr.vmem [resolvable:$true] %s96_s23 }
   0xd   : > { %p457_p8 = pnand %p293_p6, %p30_p4  ;;  %s462_s25 = scalar_lea.sflag [#allocation3], %s84_s16 }
   0xe   : > { %s329_s26 = scalar_lea.hbm %s453_s21, 512  ;;  %s334_s29 = scalar_lea.hbm %s534_s0, 2048 }
   0xf   : > { %p330_p10 = scmp.ne.s32.totalorder %s453_s21, %s329_s26  ;;  %p331_p11 = pneg %p457_p8 }
  0x10   : > { %p335_p0 = scmp.lt.u32.totalorder %s453_s21, %s534_s0  ;;  %p336_p1 = scmp.lt.u32.totalorder %s334_s29, %s329_s26 }
  0x11   : > { %p332_p12 = pnand %p331_p11, %p330_p10  ;;  %p338_p3 = scmp.lt.u32.totalorder %s329_s26, %s453_s21 }
  0x12   : > { %p337_p2 = por %p336_p1, %p335_p0 }
  0x13   : > { %p333_p13 = pneg %p332_p12 }
  0x14   : > { %p339_p4 = por %p338_p3, %p337_p2 }
  0x16   : > { %p340_p5 = pnand %p339_p4, %p333_p13 }
  0x18   : > { %343 = shalt.err (!%p340_p5)
}
  0x19   : > { %s344_s3 = scalar_lea.vmem %s455_s23, 512  ;;  %s395_s4 = smov [#allocation2]  }
  0x1a   : > { %p345_p6 = scmp.ne.s32.totalorder %s455_s23, %s344_s3  ;;  %s349_s5 = sshll.u32 %s395_s4, 4  ;;  %s350_s5 = int_to_ptr.vmem [resolvable:$false] %s349_s5 }
  0x1b   : > { %s351_s6 = scalar_lea.vmem %s350_s5, 1024  ;;  %p352_p9 = scmp.lt.s32.totalorder %s455_s23, %s350_s5 }
  0x1c   : > { %p347_p10 = pnand %p345_p6, %p331_p11  ;;  %p353_p0 = scmp.lt.s32.totalorder %s351_s6, %s344_s3 }
  0x1e   : > { %p348_p12 = pneg %p347_p10  ;;  %p354_p1 = por %p353_p0, %p352_p9 }
  0x20   : > { %p355_p2 = pnand %p354_p1, %p348_p12 }
  0x22   : > { %358 = shalt.err (!%p355_p2)
}
  0x23   : > { %s396_s12 = smov 128   ;;  %s397_s13 = smov 8  }
  0x24   : > { %292 = dma.hbm_to_vmem [thread:$0]  (!%p457_p8), %s453_s21, 512, %s455_s23, %s462_s25, %s396_s12, %s396_s12, %s397_s13  }
  0x25   : > { %p104_p11 = scmp.lt.s32.totalorder %s393_s9, 5  ;;  %p538_p13 = scmp.ge.s32.totalorder %s393_s9, 1 }
  0x27   : > { %p105_p3 = pnand %p538_p13, %p104_p11 }
  0x28   : > { %s110_s16 = sand.u32 (!%p105_p3), 1, %s385_s7  }
  0x29   : > { %108 = sbr.rel (%p105_p3) target bundleno = 176 (0xb0), region = 24  ;;  %s279_s17 = sshll.u32 (!%p105_p3), %s110_s16, 5 }
  0x2a   : > { %s111_s18 = scalar_lea.sflag (!%p105_p3), [#allocation3], %s110_s16  ;;  %s114_s19 = scalar_lea.vmem (!%p105_p3), [#allocation2], %s279_s17 }
  0x30   : > { %376 = dma.done.wait (%p444_p7), %s111_s18, 512  }
  0x31   : > { %378 = vsyncadd (%p444_p7), %s111_s18, 4294966784  ;;  %v144_v0 = vld [vmem:[%s114_s19 + $0x10] sm:$0xff]  ;;  %v142_v1 = vld [vmem:[%s114_s19] sm:$0xff]  ;;  %s398_s20 = smov 1   ;;  %s280_s21 = sshll.u32 %s270_s10, 1  ;;  %vm162_vm0 = vcmask 7168  }
  0x32   : > { %154 = vrot.lane.b32.xlu1 %v144_v0, %s398_s20  ;;  %150 = vrot.lane.b32.xlu0 %v142_v1, %s398_s20  ;;  %v145_v2 = vld [vmem:[%s114_s19 + $0x18] sm:$0xff]  ;;  %v143_v3 = vld [vmem:[%s114_s19 + $0x8] sm:$0xff]  ;;  %p136_p8 = scmp.lt.s32.totalorder %s280_s21, 7  ;;  %vm167_vm1 = vcmask 138240   ;;  %vm176_vm2 = vcmask 1042432   ;;  %vm193_vm3 = vcmask 154624  }
  0x33   : > { %vm196_vm4 = vcmask 153600  }
  0x34   : > { %s544_s21 = smov (!%p136_p8, %s280_s21), 7 }
  0x35   : > { %s286_s22 = smul.u32 24, %s544_s21 }
  0x36   : > { %156 = vrot.lane.b32.xlu1 %v145_v2, %s398_s20  ;;  %152 = vrot.lane.b32.xlu0 %v143_v3, %s398_s20 }
  0x37   : > { %s140_s10 = scalar_lea.vmem %s535_s1, %s286_s22 }
  0xa4   : > { %v155_v4 = vpop.permute.xlu1 %154  ;;  %v151_v5 = vpop.permute.xlu0 %150 }
  0xa5   : > { %v165_v6 = vsel %vm162_vm0, 0.0, %v155_v4  ;;  %v163_v7 = vsel %vm162_vm0, 0.0, %v151_v5 }
  0xa6   : > { %v170_v8 = vsel %vm167_vm1, %v165_v6, 0.0  ;;  %v168_v9 = vsel %vm167_vm1, %v163_v7, 0.0 }
  0xa7   : > { %v180_v10 = vrot.slane %v170_v8, 5  ;;  %v177_v11 = vrot.slane %v168_v9, 5 }
  0xa8   : > { %v157_v12 = vpop.permute.xlu1 %156  ;;  %v153_v13 = vpop.permute.xlu0 %152 }
  0xa9   : > { %v190_v14 = vsel %vm176_vm2, 0.0, %v180_v10  ;;  %v189_v15 = vsel %vm176_vm2, 0.0, %v177_v11  ;;  %v166_v16 = vsel %vm162_vm0, 0.0, %v157_v12  ;;  %v164_v17 = vsel %vm162_vm0, 0.0, %v153_v13 }
  0xaa   : > { %194 = vst.msk [vmem:[%s140_s10] sm:$0xff] %vm193_vm3, %v189_v15  ;;  %v171_v18 = vsel %vm167_vm1, %v166_v16, 0.0  ;;  %v169_v19 = vsel %vm167_vm1, %v164_v17, 0.0  ;;  %198 = vst.msk [vmem:[%s140_s10 + $0x18] sm:$0xff] %vm193_vm3, %v190_v14 }
  0xab   : > { %v181_v20 = vrot.slane %v171_v18, 5  ;;  %v178_v21 = vrot.slane %v169_v19, 5 }
  0xad   : > { %v182_v22 = vsel %vm176_vm2, %v180_v10, %v181_v20  ;;  %v192_v23 = vsel %vm176_vm2, %v181_v20, 0.0  ;;  %v179_v24 = vsel %vm176_vm2, %v177_v11, %v178_v21  ;;  %v191_v25 = vsel %vm176_vm2, %v178_v21, 0.0 }
  0xae   : > { %195 = vst.msk [vmem:[%s140_s10 + $0x8] sm:$0xff] %vm193_vm3, %v179_v24  ;;  %199 = vst.msk [vmem:[%s140_s10 + $0x20] sm:$0xff] %vm193_vm3, %v182_v22 }
  0xaf   : > { %197 = vst.msk [vmem:[%s140_s10 + $0x10] sm:$0x7f] %vm196_vm4, %v191_v25  ;;  %200 = vst.msk [vmem:[%s140_s10 + $0x28] sm:$0x7f] %vm196_vm4, %v192_v23 }
  0xb0 PF: > { %p11_p7 = scmp.ge.s32.totalorder %s429_s11, 6   ;;  %s539_s6 = smov %s385_s7 }
  0xb1   : > { %s540_s7 = smov %s389_s8  ;;  %s541_s8 = smov %s439_s14 }
  0xb2   : > { %s542_s9 = smov %s429_s11  ;;  %13 = sbr.rel (!%p11_p7) target bundleno = 3 (0x3), region = 64 }
  0xb9   :  { %225 = vsyncpa [#allocation3], 1 }
  0xba   :  { %227 = vsyncpa [#allocation3 + $0x1], 1 }

</bundles_post_ra>
